<compile_context>
chip_gen: v7x
topology: tpu7x:2x2x1
jax: 0.10.0
libtpu: 0.0.40
codegen_flags: <defaults>
</compile_context>

<pallas_src>
import functools

import jax
import jax.numpy as jnp
from jax.experimental import pallas as pl
from jax.experimental.pallas import tpu as pltpu

NEG_SLOPE = 0.01  # F.leaky_relu default negative_slope


def _leaky_relu(x):
    return jnp.where(x > 0, x, NEG_SLOPE * x)


def _round_up(n, m):
    return ((n + m - 1) // m) * m


# --------------------------------------------------------------------------- #
# Kernels
# --------------------------------------------------------------------------- #
def mlp_kernel(x_ref, w1_ref, b1_ref, w2_ref, b2_ref, w3_ref, b3_ref, out_ref):
    """Fused 3-layer MLP on one batch tile. Matmuls on the MXU (f32 accumulate),
    bias-add + leaky_relu on the VPU in f32."""
    cdt = w1_ref.dtype  # MXU input dtype (bf16 or f32); x is already this dtype.

    x = x_ref[...].astype(cdt)

    h1 = jnp.dot(x, w1_ref[...], preferred_element_type=jnp.float32)
    h1 = _leaky_relu(h1 + b1_ref[...].astype(jnp.float32))

    h2 = jnp.dot(h1.astype(cdt), w2_ref[...], preferred_element_type=jnp.float32)
    h2 = _leaky_relu(h2 + b2_ref[...].astype(jnp.float32))

    y = jnp.dot(h2.astype(cdt), w3_ref[...], preferred_element_type=jnp.float32)
    y = y + b3_ref[...].astype(jnp.float32)

    out_ref[...] = y.astype(out_ref.dtype)


def _linear_kernel(x_ref, w_ref, b_ref, out_ref, acc_ref, *, activate):
    """One K-tiled linear layer (fallback path): y = act(x @ W + b)."""
    k = pl.program_id(1)

    @pl.when(k == 0)
    def _():
        acc_ref[...] = jnp.zeros_like(acc_ref)

    acc_ref[...] += jnp.dot(x_ref[...], w_ref[...],
                            preferred_element_type=jnp.float32)

    @pl.when(k == pl.num_programs(1) - 1)
    def _():
        y = acc_ref[...] + b_ref[...].astype(jnp.float32)
        if activate:
            y = _leaky_relu(y)
        out_ref[...] = y.astype(out_ref.dtype)


# --------------------------------------------------------------------------- #
# pallas_call builders
# --------------------------------------------------------------------------- #
def _fused_call(x_p, w1p, b1p, w2p, b2p, w3p, b3p, *, tb, vmem_limit,
                single_buffer_weights):
    b_pad, in_p = x_p.shape
    hid_p = w1p.shape[1]
    out_p = w3p.shape[1]
    grid = (b_pad // tb,)
    w_item = jnp.dtype(w1p.dtype).itemsize
    x_item = jnp.dtype(x_p.dtype).itemsize

    def const_spec(shape):
        # Constant index_map -> block never changes -> weights stay resident.
        if single_buffer_weights:
            return pl.BlockSpec(shape, lambda i: (0, 0),
                                pipeline_mode=pl.Buffered(1))
        return pl.BlockSpec(shape, lambda i: (0, 0))

    cost = pl.CostEstimate(
        flops=2 * b_pad * (in_p * hid_p + hid_p * hid_p + hid_p * out_p),
        transcendentals=0,
        bytes_accessed=int(
            b_pad * in_p * x_item
            + (in_p * hid_p + hid_p * hid_p + hid_p * out_p) * w_item
            + (2 * hid_p + out_p) * 4
            + b_pad * out_p * 4),
    )

    return pl.pallas_call(
        mlp_kernel,
        out_shape=jax.ShapeDtypeStruct((b_pad, out_p), jnp.float32),
        grid=grid,
        in_specs=[
            pl.BlockSpec((tb, in_p), lambda i: (i, 0)),
            const_spec((in_p, hid_p)),
            const_spec((1, hid_p)),
            const_spec((hid_p, hid_p)),
            const_spec((1, hid_p)),
            const_spec((hid_p, out_p)),
            const_spec((1, out_p)),
        ],
        out_specs=pl.BlockSpec((tb, out_p), lambda i: (i, 0)),
        compiler_params=pltpu.CompilerParams(
            dimension_semantics=("parallel",),  # v7x: shard batch over both TCs
            vmem_limit_bytes=vmem_limit,
        ),
        cost_estimate=cost,
    )(x_p, w1p, b1p, w2p, b2p, w3p, b3p)


def _linear_layer(x_p, w_p, b_p, *, activate, out_dtype, tb, vmem_limit):
    """K-tiled linear layer pallas_call (fallback when weights don't all fit)."""
    b_pad, k_p = x_p.shape
    n_p = w_p.shape[1]
    tk = 512 if k_p % 512 == 0 else (256 if k_p % 256 == 0 else 128)
    tk = min(tk, k_p)
    grid = (b_pad // tb, k_p // tk)

    return pl.pallas_call(
        functools.partial(_linear_kernel, activate=activate),
        out_shape=jax.ShapeDtypeStruct((b_pad, n_p), out_dtype),
        grid=grid,
        in_specs=[
            pl.BlockSpec((tb, tk), lambda i, k: (i, k)),
            pl.BlockSpec((tk, n_p), lambda i, k: (k, 0)),
            pl.BlockSpec((1, n_p), lambda i, k: (0, 0)),
        ],
        out_specs=pl.BlockSpec((tb, n_p), lambda i, k: (i, 0)),
        scratch_shapes=[pltpu.VMEM((tb, n_p), jnp.float32)],
        compiler_params=pltpu.CompilerParams(
            dimension_semantics=("parallel", "arbitrary"),
            vmem_limit_bytes=vmem_limit,
        ),
    )(x_p, w_p, b_p)


# --------------------------------------------------------------------------- #
# Wrapper
# --------------------------------------------------------------------------- #
@functools.partial(
    jax.jit,
    static_argnames=("pdt", "tb", "vmem_limit", "single_buffer_weights",
                     "use_layerwise"))
def _mlp_impl(x, params, *, pdt, tb, vmem_limit, single_buffer_weights,
              use_layerwise):
    w1, b1, w2, b2, w3, b3 = params
    B, in_size = x.shape
    hid = w1.shape[1]
    out_size = w3.shape[1]

    in_p = _round_up(in_size, 128)
    hid_p = _round_up(hid, 128)
    out_p = _round_up(out_size, 128)

    def pad_w(w, r, c):
        return jnp.zeros((r, c), pdt).at[: w.shape[0], : w.shape[1]].set(
            w.astype(pdt))

    def pad_b(b, c):
        b = b.reshape(1, -1)
        return jnp.zeros((1, c), jnp.float32).at[:, : b.shape[1]].set(
            b.astype(jnp.float32))

    w1p, b1p = pad_w(w1, in_p, hid_p), pad_b(b1, hid_p)
    w2p, b2p = pad_w(w2, hid_p, hid_p), pad_b(b2, hid_p)
    w3p, b3p = pad_w(w3, hid_p, out_p), pad_b(b3, out_p)

    b_pad = _round_up(B, tb)
    x_p = jnp.zeros((b_pad, in_p), pdt).at[:B, :in_size].set(x.astype(pdt))

    if use_layerwise:
        h = _linear_layer(x_p, w1p, b1p, activate=True, out_dtype=pdt,
                          tb=tb, vmem_limit=vmem_limit)
        h = _linear_layer(h, w2p, b2p, activate=True, out_dtype=pdt,
                          tb=tb, vmem_limit=vmem_limit)
        out = _linear_layer(h, w3p, b3p, activate=False, out_dtype=jnp.float32,
                            tb=tb, vmem_limit=vmem_limit)
    else:
        out = _fused_call(x_p, w1p, b1p, w2p, b2p, w3p, b3p, tb=tb,
                          vmem_limit=vmem_limit,
                          single_buffer_weights=single_buffer_weights)

    # Strip padding, then PyTorch-style squeeze (drops all size-1 dims).
    return jnp.squeeze(out[:B, :out_size])


def _device_kind():
    try:
        return jax.devices()[0].device_kind.lower()
    except Exception:
        return ""


def _tpu_vmem_capacity_bytes():
    try:
        cap = int(pltpu.get_tpu_info().vmem_capacity_bytes)
        if cap > 0:
            return cap
    except Exception:
        pass
    kind = _device_kind()
    if "v7" in kind or "7x" in kind:
        return 64 * 2**20
    if "v5" in kind or "v6" in kind:
        return 128 * 2**20
    return 64 * 2**20  # conservative default


def mlp_forward(x, params, *, block_b=None, param_dtype=None,
                force_layerwise=False):
    """x: [B, input_size]. Returns squeezed output (matches torch x.squeeze())."""
    w1, b1, w2, b2, w3, b3 = params
    B, in_size = x.shape
    hid = w1.shape[1]
    out_size = w3.shape[1]

    cap = _tpu_vmem_capacity_bytes()
    kind = _device_kind()
    is_v7 = ("v7" in kind) or ("7x" in kind) or cap <= 64 * 2**20

    # bf16 MXU operands by default (accumulate + activation math stay f32 in-kernel).
    pdt = jnp.dtype(param_dtype) if param_dtype is not None else jnp.dtype(jnp.bfloat16)
    if block_b is None:
        block_b = 512 if is_v7 else 1024   # smaller default tile on v7x (64 MiB VMEM)

    in_p = _round_up(in_size, 128)
    hid_p = _round_up(hid, 128)
    out_p = _round_up(out_size, 128)
    item = pdt.itemsize

    vmem_limit = int(cap * 0.75)           # ~96 MiB on v5e/v6e, ~48 MiB on v7x
    budget = int(cap * 0.70)               # tiles are planned against this

    # Conservative resident-weight estimate (2x buffer factor also covers the
    # fallback if Buffered(1) single-buffering is unavailable).
    resident_w = 2 * ((in_p * hid_p + hid_p * hid_p + hid_p * out_p) * item
                      + (2 * hid_p + out_p) * 4)
    # Per batch-row VMEM for the fused path: double-buffered x/out tiles plus
    # the f32 h1/h2 intermediates (+ cast headroom).
    per_row_fused = 2 * in_p * item + 2 * out_p * 4 + 4 * hid_p * 4

    fused_fits = resident_w + 16 * per_row_fused + (4 << 20) <= budget
    use_layerwise = bool(force_layerwise or not fused_fits)

    if not use_layerwise:
        avail = budget - resident_w - (4 << 20)
        tb_cap = max(16, (avail // per_row_fused) // 16 * 16)
        tb = min(block_b, _round_up(B, 16), tb_cap)
    else:
        n_max = max(hid_p, out_p)
        fixed_lw = 2 * 512 * n_max * item + n_max * 4 + (4 << 20)
        per_row_lw = 2 * 512 * item + 3 * n_max * 4
        avail_lw = max(budget - fixed_lw, 16 * per_row_lw)
        tb_cap = max(16, (avail_lw // per_row_lw) // 16 * 16)
        tb = min(block_b, _round_up(B, 16), tb_cap)
    tb = max(16, (tb // 16) * 16)

    common = dict(pdt=pdt, tb=int(tb), vmem_limit=int(vmem_limit),
                  use_layerwise=use_layerwise)
    if use_layerwise:
        return _mlp_impl(x, params, single_buffer_weights=False, **common)
    try:
        # Single-buffer the constant-index weights/biases (halves their VMEM).
        return _mlp_impl(x, params, single_buffer_weights=True, **common)
    except Exception:
        # This JAX/Mosaic version rejected pl.Buffered(1); fall back to the
        # default (double-buffered) constant blocks — still correct.
        return _mlp_impl(x, params, single_buffer_weights=False, **common)


def init_params(key, input_size, hidden_size, output_size):
    """Deterministic init mimicking nn.Linear's U(-1/sqrt(fan_in), 1/sqrt(fan_in))."""
    ks = jax.random.split(key, 6)

    def linear(kw, kb, fan_in, fan_out):
        bound = 1.0 / jnp.sqrt(fan_in)
        w = jax.random.uniform(kw, (fan_in, fan_out), jnp.float32, -bound, bound)
        b = jax.random.uniform(kb, (1, fan_out), jnp.float32, -bound, bound)
        return w, b

    w1, b1 = linear(ks[0], ks[1], input_size, hidden_size)
    w2, b2 = linear(ks[2], ks[3], hidden_size, hidden_size)
    w3, b3 = linear(ks[4], ks[5], hidden_size, output_size)
    return (w1, b1, w2, b2, w3, b3)


if __name__ == "__main__":
    # NOTE: at this toy size the kernel is launch-overhead bound; the structure
    # above is what matters at realistic B / feature widths.
    input_size, hidden_size, output_size = 32, 64, 16
    batch = 8

    key = jax.random.PRNGKey(0)
    k_x, k_p = jax.random.split(key)

    x = jax.random.normal(k_x, (batch, input_size), jnp.float32)
    params = init_params(k_p, input_size, hidden_size, output_size)

    # Pure-JAX f32 reference of the same math.
    w1, b1, w2, b2, w3, b3 = params
    ref = x @ w1 + b1
    ref = jnp.where(ref > 0, ref, NEG_SLOPE * ref)
    ref = ref @ w2 + b2
    ref = jnp.where(ref > 0, ref, NEG_SLOPE * ref)
    ref = jnp.squeeze(ref @ w3 + b3)

    # 1) Fused path, f32 operands — tight check.
    out_f32 = jax.block_until_ready(mlp_forward(x, params, param_dtype=jnp.float32))
    assert out_f32.shape == ref.shape, (out_f32.shape, ref.shape)
    assert jnp.allclose(out_f32, ref, atol=1e-4, rtol=1e-5)

    # 2) Default path (bf16 MXU operands, f32 accumulate) — bf16 tolerance.
    out_bf16 = jax.block_until_ready(mlp_forward(x, params))
    assert out_bf16.shape == ref.shape
    assert jnp.allclose(out_bf16, ref, atol=3e-2, rtol=3e-2)

    # 3) K-tiled per-layer fallback path (f32) — tight check.
    out_lw = jax.block_until_ready(
        mlp_forward(x, params, param_dtype=jnp.float32, force_layerwise=True))
    assert out_lw.shape == ref.shape
    assert jnp.allclose(out_lw, ref, atol=1e-4, rtol=1e-5)

    print("KERNEL_OK")
</pallas_src>

<mosaic_0001>
module attributes {stable_mosaic.version = 11 : i64} {
  func.func @mlp_kernel(%arg0: i32, %arg1: memref<16x128xf32, #tpu.memory_space<vmem>>, %arg2: memref<128x128xf32, #tpu.memory_space<vmem>>, %arg3: memref<1x128xf32, #tpu.memory_space<vmem>>, %arg4: memref<128x128xf32, #tpu.memory_space<vmem>>, %arg5: memref<1x128xf32, #tpu.memory_space<vmem>>, %arg6: memref<128x128xf32, #tpu.memory_space<vmem>>, %arg7: memref<1x128xf32, #tpu.memory_space<vmem>>, %arg8: memref<16x128xf32, #tpu.memory_space<vmem>>) attributes {dimension_semantics = [#tpu.dimension_semantics<parallel>], iteration_bounds = array<i64: 1>, scalar_prefetch = 0 : i64, scratch_operands = 0 : i64, tpu.core_type = #tpu.core_type<tc>, window_params = [{transform_indices = @transform_0, window_bounds = array<i64: 16, 128>}, {pipeline_mode = #tpu.pipeline_mode<synchronous>, transform_indices = @transform_1, window_bounds = array<i64: 128, 128>}, {pipeline_mode = #tpu.pipeline_mode<synchronous>, transform_indices = @transform_2, window_bounds = array<i64: 1, 128>}, {pipeline_mode = #tpu.pipeline_mode<synchronous>, transform_indices = @transform_3, window_bounds = array<i64: 128, 128>}, {pipeline_mode = #tpu.pipeline_mode<synchronous>, transform_indices = @transform_4, window_bounds = array<i64: 1, 128>}, {pipeline_mode = #tpu.pipeline_mode<synchronous>, transform_indices = @transform_5, window_bounds = array<i64: 128, 128>}, {pipeline_mode = #tpu.pipeline_mode<synchronous>, transform_indices = @transform_6, window_bounds = array<i64: 1, 128>}, {transform_indices = @transform_7, window_bounds = array<i64: 16, 128>}]} {
    %c0 = arith.constant 0 : index
    %c0_0 = arith.constant 0 : index
    %0 = vector.load %arg1[%c0, %c0_0] : memref<16x128xf32, #tpu.memory_space<vmem>>, vector<16x128xf32>
    %c0_1 = arith.constant 0 : index
    %c0_2 = arith.constant 0 : index
    %1 = vector.load %arg2[%c0_1, %c0_2] : memref<128x128xf32, #tpu.memory_space<vmem>>, vector<128x128xf32>
    %cst = arith.constant dense<0.000000e+00> : vector<16x128xf32>
    %2 = tpu.matmul %0, %1, %cst {dimension_numbers = #tpu.dot_dimension_numbers<[1], [0], [0], [1], [0, 0, 1, 1], [], []>} : vector<16x128xf32>, vector<128x128xf32>, vector<16x128xf32> -> vector<16x128xf32>
    %c0_3 = arith.constant 0 : index
    %c0_4 = arith.constant 0 : index
    %3 = vector.load %arg3[%c0_3, %c0_4] : memref<1x128xf32, #tpu.memory_space<vmem>>, vector<1x128xf32>
    %4 = vector.broadcast %3 : vector<1x128xf32> to vector<16x128xf32>
    %5 = arith.addf %2, %4 : vector<16x128xf32>
    %cst_5 = arith.constant 0.000000e+00 : f32
    %6 = vector.broadcast %cst_5 : f32 to vector<16x128xf32>
    %7 = arith.cmpf ogt, %5, %6 : vector<16x128xf32>
    %cst_6 = arith.constant 0.00999999977 : f32
    %8 = vector.broadcast %cst_6 : f32 to vector<16x128xf32>
    %9 = arith.mulf %8, %5 : vector<16x128xf32>
    %10 = arith.select %7, %5, %9 : vector<16x128xi1>, vector<16x128xf32>
    %c0_7 = arith.constant 0 : index
    %c0_8 = arith.constant 0 : index
    %11 = vector.load %arg4[%c0_7, %c0_8] : memref<128x128xf32, #tpu.memory_space<vmem>>, vector<128x128xf32>
    %cst_9 = arith.constant dense<0.000000e+00> : vector<16x128xf32>
    %12 = tpu.matmul %10, %11, %cst_9 {dimension_numbers = #tpu.dot_dimension_numbers<[1], [0], [0], [1], [0, 0, 1, 1], [], []>} : vector<16x128xf32>, vector<128x128xf32>, vector<16x128xf32> -> vector<16x128xf32>
    %c0_10 = arith.constant 0 : index
    %c0_11 = arith.constant 0 : index
    %13 = vector.load %arg5[%c0_10, %c0_11] : memref<1x128xf32, #tpu.memory_space<vmem>>, vector<1x128xf32>
    %14 = vector.broadcast %13 : vector<1x128xf32> to vector<16x128xf32>
    %15 = arith.addf %12, %14 : vector<16x128xf32>
    %cst_12 = arith.constant 0.000000e+00 : f32
    %16 = vector.broadcast %cst_12 : f32 to vector<16x128xf32>
    %17 = arith.cmpf ogt, %15, %16 : vector<16x128xf32>
    %cst_13 = arith.constant 0.00999999977 : f32
    %18 = vector.broadcast %cst_13 : f32 to vector<16x128xf32>
    %19 = arith.mulf %18, %15 : vector<16x128xf32>
    %20 = arith.select %17, %15, %19 : vector<16x128xi1>, vector<16x128xf32>
    %c0_14 = arith.constant 0 : index
    %c0_15 = arith.constant 0 : index
    %21 = vector.load %arg6[%c0_14, %c0_15] : memref<128x128xf32, #tpu.memory_space<vmem>>, vector<128x128xf32>
    %cst_16 = arith.constant dense<0.000000e+00> : vector<16x128xf32>
    %22 = tpu.matmul %20, %21, %cst_16 {dimension_numbers = #tpu.dot_dimension_numbers<[1], [0], [0], [1], [0, 0, 1, 1], [], []>} : vector<16x128xf32>, vector<128x128xf32>, vector<16x128xf32> -> vector<16x128xf32>
    %c0_17 = arith.constant 0 : index
    %c0_18 = arith.constant 0 : index
    %23 = vector.load %arg7[%c0_17, %c0_18] : memref<1x128xf32, #tpu.memory_space<vmem>>, vector<1x128xf32>
    %24 = vector.broadcast %23 : vector<1x128xf32> to vector<16x128xf32>
    %25 = arith.addf %22, %24 : vector<16x128xf32>
    %c0_19 = arith.constant 0 : index
    %c0_20 = arith.constant 0 : index
    %26 = vector.load %arg8[%c0_19, %c0_20] : memref<16x128xf32, #tpu.memory_space<vmem>>, vector<16x128xf32>
    tpu.vector_store %arg8[%c0_19, %c0_20], %25 {strides = array<i32>} : memref<16x128xf32, #tpu.memory_space<vmem>>, vector<16x128xf32>,
    return
  }
  func.func @transform_0(%arg0: i32) -> (i32, i32) {
    %c0_i32 = arith.constant 0 : i32
    %c0_i32_0 = arith.constant 0 : i32
    return %arg0, %c0_i32 : i32, i32
  }
  func.func @transform_1(%arg0: i32) -> (i32, i32) {
    %c0_i32 = arith.constant 0 : i32
    %c0_i32_0 = arith.constant 0 : i32
    %c0_i32_1 = arith.constant 0 : i32
    return %c0_i32, %c0_i32_0 : i32, i32
  }
  func.func @transform_2(%arg0: i32) -> (i32, i32) {
    %c0_i32 = arith.constant 0 : i32
    %c0_i32_0 = arith.constant 0 : i32
    %c0_i32_1 = arith.constant 0 : i32
    return %c0_i32, %c0_i32_0 : i32, i32
  }
  func.func @transform_3(%arg0: i32) -> (i32, i32) {
    %c0_i32 = arith.constant 0 : i32
    %c0_i32_0 = arith.constant 0 : i32
    %c0_i32_1 = arith.constant 0 : i32
    return %c0_i32, %c0_i32_0 : i32, i32
  }
  func.func @transform_4(%arg0: i32) -> (i32, i32) {
    %c0_i32 = arith.constant 0 : i32
    %c0_i32_0 = arith.constant 0 : i32
    %c0_i32_1 = arith.constant 0 : i32
    return %c0_i32, %c0_i32_0 : i32, i32
  }
  func.func @transform_5(%arg0: i32) -> (i32, i32) {
    %c0_i32 = arith.constant 0 : i32
    %c0_i32_0 = arith.constant 0 : i32
    %c0_i32_1 = arith.constant 0 : i32
    return %c0_i32, %c0_i32_0 : i32, i32
  }
  func.func @transform_6(%arg0: i32) -> (i32, i32) {
    %c0_i32 = arith.constant 0 : i32
    %c0_i32_0 = arith.constant 0 : i32
    %c0_i32_1 = arith.constant 0 : i32
    return %c0_i32, %c0_i32_0 : i32, i32
  }
  func.func @transform_7(%arg0: i32) -> (i32, i32) {
    %c0_i32 = arith.constant 0 : i32
    %c0_i32_0 = arith.constant 0 : i32
    return %arg0, %c0_i32 : i32, i32
  }
}

module attributes {stable_mosaic.version = 11 : i64} {
  func.func @mlp_kernel(%arg0: i32, %arg1: memref<16x128xf32, #tpu.memory_space<vmem>>, %arg2: memref<128x128xf32, #tpu.memory_space<vmem>>, %arg3: memref<1x128xf32, #tpu.memory_space<vmem>>, %arg4: memref<128x128xf32, #tpu.memory_space<vmem>>, %arg5: memref<1x128xf32, #tpu.memory_space<vmem>>, %arg6: memref<128x128xf32, #tpu.memory_space<vmem>>, %arg7: memref<1x128xf32, #tpu.memory_space<vmem>>, %arg8: memref<16x128xf32, #tpu.memory_space<vmem>>) attributes {dimension_semantics = [#tpu.dimension_semantics<parallel>], iteration_bounds = array<i64: 1>, scalar_prefetch = 0 : i64, scratch_operands = 0 : i64, tpu.core_type = #tpu.core_type<tc>, window_params = [{transform_indices = @transform_0, window_bounds = array<i64: 16, 128>}, {pipeline_mode = #tpu.pipeline_mode<synchronous>, transform_indices = @transform_1, window_bounds = array<i64: 128, 128>}, {pipeline_mode = #tpu.pipeline_mode<synchronous>, transform_indices = @transform_2, window_bounds = array<i64: 1, 128>}, {pipeline_mode = #tpu.pipeline_mode<synchronous>, transform_indices = @transform_3, window_bounds = array<i64: 128, 128>}, {pipeline_mode = #tpu.pipeline_mode<synchronous>, transform_indices = @transform_4, window_bounds = array<i64: 1, 128>}, {pipeline_mode = #tpu.pipeline_mode<synchronous>, transform_indices = @transform_5, window_bounds = array<i64: 128, 128>}, {pipeline_mode = #tpu.pipeline_mode<synchronous>, transform_indices = @transform_6, window_bounds = array<i64: 1, 128>}, {transform_indices = @transform_7, window_bounds = array<i64: 16, 128>}]} {
    %c0 = arith.constant 0 : index
    %c0_0 = arith.constant 0 : index
    %0 = vector.load %arg1[%c0, %c0_0] : memref<16x128xf32, #tpu.memory_space<vmem>>, vector<16x128xf32>
    %c0_1 = arith.constant 0 : index
    %c0_2 = arith.constant 0 : index
    %1 = vector.load %arg2[%c0_1, %c0_2] : memref<128x128xf32, #tpu.memory_space<vmem>>, vector<128x128xf32>
    %cst = arith.constant dense<0.000000e+00> : vector<16x128xf32>
    %2 = tpu.matmul %0, %1, %cst {dimension_numbers = #tpu.dot_dimension_numbers<[1], [0], [0], [1], [0, 0, 1, 1], [], []>} : vector<16x128xf32>, vector<128x128xf32>, vector<16x128xf32> -> vector<16x128xf32>
    %c0_3 = arith.constant 0 : index
    %c0_4 = arith.constant 0 : index
    %3 = vector.load %arg3[%c0_3, %c0_4] : memref<1x128xf32, #tpu.memory_space<vmem>>, vector<1x128xf32>
    %4 = vector.broadcast %3 : vector<1x128xf32> to vector<16x128xf32>
    %5 = arith.addf %2, %4 : vector<16x128xf32>
    %cst_5 = arith.constant 0.000000e+00 : f32
    %6 = vector.broadcast %cst_5 : f32 to vector<16x128xf32>
    %7 = arith.cmpf ogt, %5, %6 : vector<16x128xf32>
    %cst_6 = arith.constant 0.00999999977 : f32
    %8 = vector.broadcast %cst_6 : f32 to vector<16x128xf32>
    %9 = arith.mulf %8, %5 : vector<16x128xf32>
    %10 = arith.select %7, %5, %9 : vector<16x128xi1>, vector<16x128xf32>
    %c0_7 = arith.constant 0 : index
    %c0_8 = arith.constant 0 : index
    %11 = vector.load %arg4[%c0_7, %c0_8] : memref<128x128xf32, #tpu.memory_space<vmem>>, vector<128x128xf32>
    %cst_9 = arith.constant dense<0.000000e+00> : vector<16x128xf32>
    %12 = tpu.matmul %10, %11, %cst_9 {dimension_numbers = #tpu.dot_dimension_numbers<[1], [0], [0], [1], [0, 0, 1, 1], [], []>} : vector<16x128xf32>, vector<128x128xf32>, vector<16x128xf32> -> vector<16x128xf32>
    %c0_10 = arith.constant 0 : index
    %c0_11 = arith.constant 0 : index
    %13 = vector.load %arg5[%c0_10, %c0_11] : memref<1x128xf32, #tpu.memory_space<vmem>>, vector<1x128xf32>
    %14 = vector.broadcast %13 : vector<1x128xf32> to vector<16x128xf32>
    %15 = arith.addf %12, %14 : vector<16x128xf32>
    %cst_12 = arith.constant 0.000000e+00 : f32
    %16 = vector.broadcast %cst_12 : f32 to vector<16x128xf32>
    %17 = arith.cmpf ogt, %15, %16 : vector<16x128xf32>
    %cst_13 = arith.constant 0.00999999977 : f32
    %18 = vector.broadcast %cst_13 : f32 to vector<16x128xf32>
    %19 = arith.mulf %18, %15 : vector<16x128xf32>
    %20 = arith.select %17, %15, %19 : vector<16x128xi1>, vector<16x128xf32>
    %c0_14 = arith.constant 0 : index
    %c0_15 = arith.constant 0 : index
    %21 = vector.load %arg6[%c0_14, %c0_15] : memref<128x128xf32, #tpu.memory_space<vmem>>, vector<128x128xf32>
    %cst_16 = arith.constant dense<0.000000e+00> : vector<16x128xf32>
    %22 = tpu.matmul %20, %21, %cst_16 {dimension_numbers = #tpu.dot_dimension_numbers<[1], [0], [0], [1], [0, 0, 1, 1], [], []>} : vector<16x128xf32>, vector<128x128xf32>, vector<16x128xf32> -> vector<16x128xf32>
    %c0_17 = arith.constant 0 : index
    %c0_18 = arith.constant 0 : index
    %23 = vector.load %arg7[%c0_17, %c0_18] : memref<1x128xf32, #tpu.memory_space<vmem>>, vector<1x128xf32>
    %24 = vector.broadcast %23 : vector<1x128xf32> to vector<16x128xf32>
    %25 = arith.addf %22, %24 : vector<16x128xf32>
    %c0_19 = arith.constant 0 : index
    %c0_20 = arith.constant 0 : index
    %26 = vector.load %arg8[%c0_19, %c0_20] : memref<16x128xf32, #tpu.memory_space<vmem>>, vector<16x128xf32>
    tpu.vector_store %arg8[%c0_19, %c0_20], %25 {strides = array<i32>} : memref<16x128xf32, #tpu.memory_space<vmem>>, vector<16x128xf32>,
    return
  }
  func.func @transform_0(%arg0: i32) -> (i32, i32) {
    %c0_i32 = arith.constant 0 : i32
    %c0_i32_0 = arith.constant 0 : i32
    return %arg0, %c0_i32 : i32, i32
  }
  func.func @transform_1(%arg0: i32) -> (i32, i32) {
    %c0_i32 = arith.constant 0 : i32
    %c0_i32_0 = arith.constant 0 : i32
    %c0_i32_1 = arith.constant 0 : i32
    return %c0_i32, %c0_i32_0 : i32, i32
  }
  func.func @transform_2(%arg0: i32) -> (i32, i32) {
    %c0_i32 = arith.constant 0 : i32
    %c0_i32_0 = arith.constant 0 : i32
    %c0_i32_1 = arith.constant 0 : i32
    return %c0_i32, %c0_i32_0 : i32, i32
  }
  func.func @transform_3(%arg0: i32) -> (i32, i32) {
    %c0_i32 = arith.constant 0 : i32
    %c0_i32_0 = arith.constant 0 : i32
    %c0_i32_1 = arith.constant 0 : i32
    return %c0_i32, %c0_i32_0 : i32, i32
  }
  func.func @transform_4(%arg0: i32) -> (i32, i32) {
    %c0_i32 = arith.constant 0 : i32
    %c0_i32_0 = arith.constant 0 : i32
    %c0_i32_1 = arith.constant 0 : i32
    return %c0_i32, %c0_i32_0 : i32, i32
  }
  func.func @transform_5(%arg0: i32) -> (i32, i32) {
    %c0_i32 = arith.constant 0 : i32
    %c0_i32_0 = arith.constant 0 : i32
    %c0_i32_1 = arith.constant 0 : i32
    return %c0_i32, %c0_i32_0 : i32, i32
  }
  func.func @transform_6(%arg0: i32) -> (i32, i32) {
    %c0_i32 = arith.constant 0 : i32
    %c0_i32_0 = arith.constant 0 : i32
    %c0_i32_1 = arith.constant 0 : i32
    return %c0_i32, %c0_i32_0 : i32, i32
  }
  func.func @transform_7(%arg0: i32) -> (i32, i32) {
    %c0_i32 = arith.constant 0 : i32
    %c0_i32_0 = arith.constant 0 : i32
    return %arg0, %c0_i32 : i32, i32
  }
}

</mosaic_0001>

<bundles_post_ra>
// kernel: _mlp_impl.1
= control target key start
LH: loop header
LB: loop body
LE: loop exit
PB: predicated region body
PF: predicated region fallthrough
CT: control target
= control target key end

     0   :  { %s803_s1 = inlined_call_operand.vmem [shape: f32[128,128], index: 1, kind: input, shape index: {}]   ;;  %s804_s0 = inlined_call_operand.vmem [shape: f32[16,128], index: 0, kind: input, shape index: {}]   ;;  %s805_s3 = inlined_call_operand.vmem [shape: f32[128,128], index: 3, kind: input, shape index: {}]   ;;  %s806_s5 = inlined_call_operand.vmem [shape: f32[128,128], index: 5, kind: input, shape index: {}]   ;;  %s807_s2 = inlined_call_operand.vmem [shape: f32[1,128], index: 2, kind: input, shape index: {}]   ;;  %s808_s4 = inlined_call_operand.vmem [shape: f32[1,128], index: 4, kind: input, shape index: {}]   ;;  %s809_s6 = inlined_call_operand.vmem [shape: f32[1,128], index: 6, kind: input, shape index: {}]   ;;  %s810_s7 = inlined_call_operand.vmem [shape: f32[16,128], index: 7, kind: output, shape index: {}]  }
   0x1   :  { %v28_v0 = vld [vmem:[%s803_s1] sm:$0xff]  ;;  %v29_v1 = vld [vmem:[%s803_s1 + $0x8] sm:$0xff]  ;;  %v30_v2 = vld [vmem:[%s803_s1 + $0x10] sm:$0xff] }
   0x2   :  { %v502_v3 = vpack.c.bf16 %v29_v1, %v28_v0  ;;  %v31_v4 = vld [vmem:[%s803_s1 + $0x18] sm:$0xff]  ;;  %v32_v6 = vld [vmem:[%s803_s1 + $0x20] sm:$0xff]  ;;  %v33_v7 = vld [vmem:[%s803_s1 + $0x28] sm:$0xff] }
   0x3   :  { %v506_v5 = vpack.c.bf16 %v31_v4, %v30_v2  ;;  %v510_v8 = vpack.c.bf16 %v33_v7, %v32_v6  ;;  %v34_v9 = vld [vmem:[%s803_s1 + $0x30] sm:$0xff]  ;;  %v35_v10 = vld [vmem:[%s803_s1 + $0x38] sm:$0xff]  ;;  %v26_v11 = vld [vmem:[%s804_s0] sm:$0xff] }
   0x4   :  { %503 = vmatprep.subr.bf16.mxu0 %v502_v3  ;;  %429 = vmatprep.mubr.f32.mxu0 %v26_v11  ;;  %v132_v12 = vld [vmem:[%s805_s3] sm:$0xff]  ;;  %v133_v13 = vld [vmem:[%s805_s3 + $0x8] sm:$0xff]  ;;  %v134_v14 = vld [vmem:[%s805_s3 + $0x10] sm:$0xff]  ;;  %v514_v20 = vpack.c.bf16 %v35_v10, %v34_v9 }
   0x5   :  { %505 = vmatpush3.bf16.msra.mxu0 %v502_v3  ;;  %v534_v15 = vpack.c.bf16 %v133_v13, %v132_v12  ;;  %v135_v16 = vld [vmem:[%s805_s3 + $0x18] sm:$0xff]  ;;  %v136_v18 = vld [vmem:[%s805_s3 + $0x20] sm:$0xff]  ;;  %v137_v19 = vld [vmem:[%s805_s3 + $0x28] sm:$0xff] }
   0x6   :  { %507 = vmatprep.subr.bf16.mxu0 %v506_v5  ;;  %v538_v17 = vpack.c.bf16 %v135_v16, %v134_v14  ;;  %v36_v21 = vld [vmem:[%s803_s1 + $0x40] sm:$0xff]  ;;  %v37_v22 = vld [vmem:[%s803_s1 + $0x48] sm:$0xff]  ;;  %v542_v23 = vpack.c.bf16 %v137_v19, %v136_v18  ;;  %v138_v24 = vld [vmem:[%s805_s3 + $0x30] sm:$0xff] }
   0x7   :  { %535 = vmatprep.subr.bf16.mxu1 %v534_v15  ;;  %v139_v25 = vld [vmem:[%s805_s3 + $0x38] sm:$0xff]  ;;  %v518_v26 = vpack.c.bf16 %v37_v22, %v36_v21  ;;  %v38_v27 = vld [vmem:[%s803_s1 + $0x50] sm:$0xff]  ;;  %v140_v30 = vld [vmem:[%s805_s3 + $0x40] sm:$0xff] }
   0x8   :  { %537 = vmatpush3.bf16.msra.mxu1 %v534_v15  ;;  %v39_v28 = vld [vmem:[%s803_s1 + $0x58] sm:$0xff]  ;;  %v546_v29 = vpack.c.bf16 %v139_v25, %v138_v24  ;;  %v141_v31 = vld [vmem:[%s805_s3 + $0x48] sm:$0xff]  ;;  %v40_v33 = vld [vmem:[%s803_s1 + $0x60] sm:$0xff] }
   0x9   :  { %509 = vmatpush3.bf16.msra.mxu0 %v506_v5  ;;  %539 = vmatprep.subr.bf16.mxu1 %v538_v17  ;;  %v522_v32 = vpack.c.bf16 %v39_v28, %v38_v27  ;;  %v41_v34 = vld [vmem:[%s803_s1 + $0x68] sm:$0xff]  ;;  %v550_v35 = vpack.c.bf16 %v141_v31, %v140_v30  ;;  %v142_v36 = vld [vmem:[%s805_s3 + $0x50] sm:$0xff]  ;;  %v143_v37 = vld [vmem:[%s805_s3 + $0x58] sm:$0xff] }
   0xa   :  { %511 = vmatprep.subr.bf16.mxu0 %v510_v8  ;;  %v526_v38 = vpack.c.bf16 %v41_v34, %v40_v33  ;;  %v42_v39 = vld [vmem:[%s803_s1 + $0x70] sm:$0xff]  ;;  %v43_v40 = vld [vmem:[%s803_s1 + $0x78] sm:$0xff]  ;;  %v554_v41 = vpack.c.bf16 %v143_v37, %v142_v36  ;;  %v27_v43 = vld [vmem:[%s804_s0 + $0x8] sm:$0xff] }
   0xb   :  { %v530_v42 = vpack.c.bf16 %v43_v40, %v42_v39  ;;  %v144_v44 = vld [vmem:[%s805_s3 + $0x60] sm:$0xff]  ;;  %v145_v45 = vld [vmem:[%s805_s3 + $0x68] sm:$0xff]  ;;  %v146_v47 = vld [vmem:[%s805_s3 + $0x70] sm:$0xff] }
   0xc   :  { %541 = vmatpush3.bf16.msra.mxu1 %v538_v17  ;;  %v558_v46 = vpack.c.bf16 %v145_v45, %v144_v44  ;;  %v147_v48 = vld [vmem:[%s805_s3 + $0x78] sm:$0xff]  ;;  %v236_v50 = vld [vmem:[%s806_s5] sm:$0xff]  ;;  %v237_v51 = vld [vmem:[%s806_s5 + $0x8] sm:$0xff] }
   0xd   :  { %513 = vmatpush3.bf16.msra.mxu0 %v510_v8  ;;  %543 = vmatprep.subr.bf16.mxu1 %v542_v23  ;;  %v562_v49 = vpack.c.bf16 %v147_v48, %v146_v47  ;;  %v238_v52 = vld [vmem:[%s806_s5 + $0x10] sm:$0xff]  ;;  %v566_v53 = vpack.c.bf16 %v237_v51, %v236_v50  ;;  %v239_v54 = vld [vmem:[%s806_s5 + $0x18] sm:$0xff]  ;;  %v240_v56 = vld [vmem:[%s806_s5 + $0x20] sm:$0xff] }
   0xe   :  { %515 = vmatprep.subr.bf16.mxu0 %v514_v20  ;;  %v570_v55 = vpack.c.bf16 %v239_v54, %v238_v52  ;;  %v241_v57 = vld [vmem:[%s806_s5 + $0x28] sm:$0xff]  ;;  %v242_v59 = vld [vmem:[%s806_s5 + $0x30] sm:$0xff]  ;;  %v243_v60 = vld [vmem:[%s806_s5 + $0x38] sm:$0xff] }
   0xf   :  { %v574_v58 = vpack.c.bf16 %v241_v57, %v240_v56  ;;  %v578_v61 = vpack.c.bf16 %v243_v60, %v242_v59  ;;  %v244_v62 = vld [vmem:[%s806_s5 + $0x40] sm:$0xff]  ;;  %v245_v63 = vld [vmem:[%s806_s5 + $0x48] sm:$0xff]  ;;  %v246_v1 = vld [vmem:[%s806_s5 + $0x50] sm:$0xff] }
  0x10   :  { %545 = vmatpush3.bf16.msra.mxu1 %v542_v23  ;;  %v582_v0 = vpack.c.bf16 %v245_v63, %v244_v62  ;;  %v247_v2 = vld [vmem:[%s806_s5 + $0x58] sm:$0xff]  ;;  %v340_v4 = vld [vmem:[%s807_s2] ss:$0 sm:$0xff]  ;;  %v249_v14 = vld [vmem:[%s806_s5 + $0x68] sm:$0xff] }
  0x11   :  { %517 = vmatpush3.bf16.msra.mxu0 %v514_v20  ;;  %547 = vmatprep.subr.bf16.mxu1 %v546_v29  ;;  %v586_v3 = vpack.c.bf16 %v247_v2, %v246_v1  ;;  %v248_v13 = vld [vmem:[%s806_s5 + $0x60] sm:$0xff]  ;;  %v250_v16 = vld [vmem:[%s806_s5 + $0x70] sm:$0xff]  ;;  %v251_v17 = vld [vmem:[%s806_s5 + $0x78] sm:$0xff] }
  0x12   :  { %519 = vmatprep.subr.bf16.mxu0 %v518_v26  ;;  %v590_v15 = vpack.c.bf16 %v249_v14, %v248_v13  ;;  %v594_v18 = vpack.c.bf16 %v251_v17, %v250_v16  ;;  %v341_v19 = vld [vmem:[%s808_s4] ss:$0 sm:$0xff] }
  0x13   :  { %v342_v28 = vld [vmem:[%s809_s6] ss:$0 sm:$0xff] }
  0x14   :  { %549 = vmatpush3.bf16.msra.mxu1 %v546_v29 }
  0x15   :  { %521 = vmatpush3.bf16.msra.mxu0 %v518_v26  ;;  %551 = vmatprep.subr.bf16.mxu1 %v550_v35 }
  0x16   :  { %523 = vmatprep.subr.bf16.mxu0 %v522_v32 }
  0x18   :  { %553 = vmatpush3.bf16.msra.mxu1 %v550_v35 }
  0x19   :  { %525 = vmatpush3.bf16.msra.mxu0 %v522_v32  ;;  %555 = vmatprep.subr.bf16.mxu1 %v554_v41 }
  0x1a   :  { %527 = vmatprep.subr.bf16.mxu0 %v526_v38 }
  0x1c   :  { %557 = vmatpush3.bf16.msra.mxu1 %v554_v41 }
  0x1d   :  { %529 = vmatpush3.bf16.msra.mxu0 %v526_v38  ;;  %559 = vmatprep.subr.bf16.mxu1 %v558_v46 }
  0x1e   :  { %531 = vmatprep.subr.bf16.mxu0 %v530_v42 }
  0x20   :  { %561 = vmatpush3.bf16.msra.mxu1 %v558_v46 }
  0x21   :  { %533 = vmatpush3.bf16.msra.mxu0 %v530_v42  ;;  %563 = vmatprep.subr.bf16.mxu1 %v562_v49 }
  0x22   :  { %567 = vmatprep.subr.bf16.mxu0 %v566_v53 }
  0x24   :  { %430 = vmatmul.mubr.f32.vlgmr.msra.gmra.mrb[0].mxu0 %v27_v43  ;;  %565 = vmatpush3.bf16.msra.mxu1 %v562_v49 }
  0x25   :  { %569 = vmatpush3.bf16.msra.mxu0 %v566_v53 }
  0x26   :  { %571 = vmatprep.subr.bf16.mxu0 %v570_v55 }
  0x29   :  { %573 = vmatpush3.bf16.msra.mxu0 %v570_v55 }
  0x2a   :  { %575 = vmatprep.subr.bf16.mxu0 %v574_v58 }
  0x2d   :  { %577 = vmatpush3.bf16.msra.mxu0 %v574_v58 }
  0x2e   :  { %579 = vmatprep.subr.bf16.mxu0 %v578_v61 }
  0x31   :  { %581 = vmatpush3.bf16.msra.mxu0 %v578_v61 }
  0x32   :  { %583 = vmatprep.subr.bf16.mxu0 %v582_v0 }
  0x35   :  { %585 = vmatpush3.bf16.msra.mxu0 %v582_v0 }
  0x36   :  { %587 = vmatprep.subr.bf16.mxu0 %v586_v3 }
  0x39   :  { %589 = vmatpush3.bf16.msra.mxu0 %v586_v3 }
  0x3a   :  { %591 = vmatprep.subr.bf16.mxu0 %v590_v15 }
  0x3d   :  { %593 = vmatpush3.bf16.msra.mxu0 %v590_v15 }
  0x3e   :  { %595 = vmatprep.subr.bf16.mxu0 %v594_v18 }
  0x41   :  { %597 = vmatpush3.bf16.msra.mxu0 %v594_v18 }
  0xf7   :  { %v431_v5 = vpop.f32.mrb[0].mxu0 }
  0xf8   :  { %v123_v6 = vadd.f32 %v431_v5, %v340_v4  ;;  %v117_v7 = vpop.f32.mrb[1].mxu0 }
  0xf9   :  { %v118_v8 = vadd.f32 %v340_v4, %v117_v7 }
  0xfa   :  { %v129_v9 = vmul.f32 0.01, %v123_v6  ;;  %vm127_vm1 = vcmp.gt.f32.partialorder %v123_v6, 0.0 }
  0xfb   :  { %vm126_vm0 = vcmp.gt.f32.partialorder %v118_v8, 0.0  ;;  %v128_v10 = vmul.f32 0.01, %v118_v8 }
  0xfc   :  { %v131_v12 = vsel %vm127_vm1, %v123_v6, %v129_v9 }
  0xfd   :  { %v130_v11 = vsel %vm126_vm0, %v118_v8, %v128_v10 }
  0xfe   :  { %464 = vmatprep.mubr.f32.mxu1 %v130_v11 }
  0xff   :  { %465 = vmatmul.mubr.f32.vlgmr.msra.gmra.mrb[0].mxu1 %v131_v12 }
 0x1d2   :  { %v466_v20 = vpop.f32.mrb[0].mxu1 }
 0x1d3   :  { %v227_v21 = vadd.f32 %v466_v20, %v341_v19  ;;  %v221_v22 = vpop.f32.mrb[1].mxu1 }
 0x1d4   :  { %v222_v23 = vadd.f32 %v341_v19, %v221_v22 }
 0x1d5   :  { %v233_v24 = vmul.f32 0.01, %v227_v21  ;;  %vm231_vm2 = vcmp.gt.f32.partialorder %v227_v21, 0.0 }
 0x1d6   :  { %v232_v25 = vmul.f32 0.01, %v222_v23  ;;  %vm230_vm3 = vcmp.gt.f32.partialorder %v222_v23, 0.0 }
 0x1d7   :  { %v235_v27 = vsel %vm231_vm2, %v227_v21, %v233_v24 }
 0x1d8   :  { %v234_v26 = vsel %vm230_vm3, %v222_v23, %v232_v25 }
 0x1d9   :  { %499 = vmatprep.mubr.f32.mxu0 %v234_v26 }
 0x1da   :  { %500 = vmatmul.mubr.f32.vlgmr.msra.gmra.mrb[2].mxu0 %v235_v27 }
 0x2ad   :  { %v501_v29 = vpop.f32.mrb[2].mxu0 }
 0x2ae   :  { %v331_v30 = vadd.f32 %v501_v29, %v342_v28  ;;  %v325_v31 = vpop.f32.mrb[3].mxu0 }
 0x2af   :  { %v326_v32 = vadd.f32 %v342_v28, %v325_v31 }
 0x2b0   :  { %335 = vst [vmem:[%s810_s7 + $0x8] sm:$0xff] %v331_v30 }
 0x2b1   :  { %334 = vst [vmem:[%s810_s7] sm:$0xff] %v326_v32 }

// kernel: _mlp_impl.1
= control target key start
LH: loop header
LB: loop body
LE: loop exit
PB: predicated region body
PF: predicated region fallthrough
CT: control target
= control target key end

     0   :  { %s803_s1 = inlined_call_operand.vmem [shape: f32[128,128], index: 1, kind: input, shape index: {}]   ;;  %s804_s0 = inlined_call_operand.vmem [shape: f32[16,128], index: 0, kind: input, shape index: {}]   ;;  %s805_s3 = inlined_call_operand.vmem [shape: f32[128,128], index: 3, kind: input, shape index: {}]   ;;  %s806_s5 = inlined_call_operand.vmem [shape: f32[128,128], index: 5, kind: input, shape index: {}]   ;;  %s807_s2 = inlined_call_operand.vmem [shape: f32[1,128], index: 2, kind: input, shape index: {}]   ;;  %s808_s4 = inlined_call_operand.vmem [shape: f32[1,128], index: 4, kind: input, shape index: {}]   ;;  %s809_s6 = inlined_call_operand.vmem [shape: f32[1,128], index: 6, kind: input, shape index: {}]   ;;  %s810_s7 = inlined_call_operand.vmem [shape: f32[16,128], index: 7, kind: output, shape index: {}]  }
   0x1   :  { %v28_v0 = vld [vmem:[%s803_s1] sm:$0xff]  ;;  %v29_v1 = vld [vmem:[%s803_s1 + $0x8] sm:$0xff]  ;;  %v30_v2 = vld [vmem:[%s803_s1 + $0x10] sm:$0xff] }
   0x2   :  { %v502_v3 = vpack.c.bf16 %v29_v1, %v28_v0  ;;  %v31_v4 = vld [vmem:[%s803_s1 + $0x18] sm:$0xff]  ;;  %v32_v6 = vld [vmem:[%s803_s1 + $0x20] sm:$0xff]  ;;  %v33_v7 = vld [vmem:[%s803_s1 + $0x28] sm:$0xff] }
   0x3   :  { %v506_v5 = vpack.c.bf16 %v31_v4, %v30_v2  ;;  %v510_v8 = vpack.c.bf16 %v33_v7, %v32_v6  ;;  %v34_v9 = vld [vmem:[%s803_s1 + $0x30] sm:$0xff]  ;;  %v35_v10 = vld [vmem:[%s803_s1 + $0x38] sm:$0xff]  ;;  %v26_v11 = vld [vmem:[%s804_s0] sm:$0xff] }
   0x4   :  { %503 = vmatprep.subr.bf16.mxu0 %v502_v3  ;;  %429 = vmatprep.mubr.f32.mxu0 %v26_v11  ;;  %v132_v12 = vld [vmem:[%s805_s3] sm:$0xff]  ;;  %v133_v13 = vld [vmem:[%s805_s3 + $0x8] sm:$0xff]  ;;  %v134_v14 = vld [vmem:[%s805_s3 + $0x10] sm:$0xff]  ;;  %v514_v20 = vpack.c.bf16 %v35_v10, %v34_v9 }
   0x5   :  { %505 = vmatpush3.bf16.msra.mxu0 %v502_v3  ;;  %v534_v15 = vpack.c.bf16 %v133_v13, %v132_v12  ;;  %v135_v16 = vld [vmem:[%s805_s3 + $0x18] sm:$0xff]  ;;  %v136_v18 = vld [vmem:[%s805_s3 + $0x20] sm:$0xff]  ;;  %v137_v19 = vld [vmem:[%s805_s3 + $0x28] sm:$0xff] }
   0x6   :  { %507 = vmatprep.subr.bf16.mxu0 %v506_v5  ;;  %v538_v17 = vpack.c.bf16 %v135_v16, %v134_v14  ;;  %v36_v21 = vld [vmem:[%s803_s1 + $0x40] sm:$0xff]  ;;  %v37_v22 = vld [vmem:[%s803_s1 + $0x48] sm:$0xff]  ;;  %v542_v23 = vpack.c.bf16 %v137_v19, %v136_v18  ;;  %v138_v24 = vld [vmem:[%s805_s3 + $0x30] sm:$0xff] }
   0x7   :  { %535 = vmatprep.subr.bf16.mxu1 %v534_v15  ;;  %v139_v25 = vld [vmem:[%s805_s3 + $0x38] sm:$0xff]  ;;  %v518_v26 = vpack.c.bf16 %v37_v22, %v36_v21  ;;  %v38_v27 = vld [vmem:[%s803_s1 + $0x50] sm:$0xff]  ;;  %v140_v30 = vld [vmem:[%s805_s3 + $0x40] sm:$0xff] }
   0x8   :  { %537 = vmatpush3.bf16.msra.mxu1 %v534_v15  ;;  %v39_v28 = vld [vmem:[%s803_s1 + $0x58] sm:$0xff]  ;;  %v546_v29 = vpack.c.bf16 %v139_v25, %v138_v24  ;;  %v141_v31 = vld [vmem:[%s805_s3 + $0x48] sm:$0xff]  ;;  %v40_v33 = vld [vmem:[%s803_s1 + $0x60] sm:$0xff] }
   0x9   :  { %509 = vmatpush3.bf16.msra.mxu0 %v506_v5  ;;  %539 = vmatprep.subr.bf16.mxu1 %v538_v17  ;;  %v522_v32 = vpack.c.bf16 %v39_v28, %v38_v27  ;;  %v41_v34 = vld [vmem:[%s803_s1 + $0x68] sm:$0xff]  ;;  %v550_v35 = vpack.c.bf16 %v141_v31, %v140_v30  ;;  %v142_v36 = vld [vmem:[%s805_s3 + $0x50] sm:$0xff]  ;;  %v143_v37 = vld [vmem:[%s805_s3 + $0x58] sm:$0xff] }
   0xa   :  { %511 = vmatprep.subr.bf16.mxu0 %v510_v8  ;;  %v526_v38 = vpack.c.bf16 %v41_v34, %v40_v33  ;;  %v42_v39 = vld [vmem:[%s803_s1 + $0x70] sm:$0xff]  ;;  %v43_v40 = vld [vmem:[%s803_s1 + $0x78] sm:$0xff]  ;;  %v554_v41 = vpack.c.bf16 %v143_v37, %v142_v36  ;;  %v27_v43 = vld [vmem:[%s804_s0 + $0x8] sm:$0xff] }
   0xb   :  { %v530_v42 = vpack.c.bf16 %v43_v40, %v42_v39  ;;  %v144_v44 = vld [vmem:[%s805_s3 + $0x60] sm:$0xff]  ;;  %v145_v45 = vld [vmem:[%s805_s3 + $0x68] sm:$0xff]  ;;  %v146_v47 = vld [vmem:[%s805_s3 + $0x70] sm:$0xff] }
   0xc   :  { %541 = vmatpush3.bf16.msra.mxu1 %v538_v17  ;;  %v558_v46 = vpack.c.bf16 %v145_v45, %v144_v44  ;;  %v147_v48 = vld [vmem:[%s805_s3 + $0x78] sm:$0xff]  ;;  %v236_v50 = vld [vmem:[%s806_s5] sm:$0xff]  ;;  %v237_v51 = vld [vmem:[%s806_s5 + $0x8] sm:$0xff] }
   0xd   :  { %513 = vmatpush3.bf16.msra.mxu0 %v510_v8  ;;  %543 = vmatprep.subr.bf16.mxu1 %v542_v23  ;;  %v562_v49 = vpack.c.bf16 %v147_v48, %v146_v47  ;;  %v238_v52 = vld [vmem:[%s806_s5 + $0x10] sm:$0xff]  ;;  %v566_v53 = vpack.c.bf16 %v237_v51, %v236_v50  ;;  %v239_v54 = vld [vmem:[%s806_s5 + $0x18] sm:$0xff]  ;;  %v240_v56 = vld [vmem:[%s806_s5 + $0x20] sm:$0xff] }
   0xe   :  { %515 = vmatprep.subr.bf16.mxu0 %v514_v20  ;;  %v570_v55 = vpack.c.bf16 %v239_v54, %v238_v52  ;;  %v241_v57 = vld [vmem:[%s806_s5 + $0x28] sm:$0xff]  ;;  %v242_v59 = vld [vmem:[%s806_s5 + $0x30] sm:$0xff]  ;;  %v243_v60 = vld [vmem:[%s806_s5 + $0x38] sm:$0xff] }
   0xf   :  { %v574_v58 = vpack.c.bf16 %v241_v57, %v240_v56  ;;  %v578_v61 = vpack.c.bf16 %v243_v60, %v242_v59  ;;  %v244_v62 = vld [vmem:[%s806_s5 + $0x40] sm:$0xff]  ;;  %v245_v63 = vld [vmem:[%s806_s5 + $0x48] sm:$0xff]  ;;  %v246_v1 = vld [vmem:[%s806_s5 + $0x50] sm:$0xff] }
  0x10   :  { %545 = vmatpush3.bf16.msra.mxu1 %v542_v23  ;;  %v582_v0 = vpack.c.bf16 %v245_v63, %v244_v62  ;;  %v247_v2 = vld [vmem:[%s806_s5 + $0x58] sm:$0xff]  ;;  %v340_v4 = vld [vmem:[%s807_s2] ss:$0 sm:$0xff]  ;;  %v249_v14 = vld [vmem:[%s806_s5 + $0x68] sm:$0xff] }
  0x11   :  { %517 = vmatpush3.bf16.msra.mxu0 %v514_v20  ;;  %547 = vmatprep.subr.bf16.mxu1 %v546_v29  ;;  %v586_v3 = vpack.c.bf16 %v247_v2, %v246_v1  ;;  %v248_v13 = vld [vmem:[%s806_s5 + $0x60] sm:$0xff]  ;;  %v250_v16 = vld [vmem:[%s806_s5 + $0x70] sm:$0xff]  ;;  %v251_v17 = vld [vmem:[%s806_s5 + $0x78] sm:$0xff] }
  0x12   :  { %519 = vmatprep.subr.bf16.mxu0 %v518_v26  ;;  %v590_v15 = vpack.c.bf16 %v249_v14, %v248_v13  ;;  %v594_v18 = vpack.c.bf16 %v251_v17, %v250_v16  ;;  %v341_v19 = vld [vmem:[%s808_s4] ss:$0 sm:$0xff] }
  0x13   :  { %v342_v28 = vld [vmem:[%s809_s6] ss:$0 sm:$0xff] }
  0x14   :  { %549 = vmatpush3.bf16.msra.mxu1 %v546_v29 }
  0x15   :  { %521 = vmatpush3.bf16.msra.mxu0 %v518_v26  ;;  %551 = vmatprep.subr.bf16.mxu1 %v550_v35 }
  0x16   :  { %523 = vmatprep.subr.bf16.mxu0 %v522_v32 }
  0x18   :  { %553 = vmatpush3.bf16.msra.mxu1 %v550_v35 }
  0x19   :  { %525 = vmatpush3.bf16.msra.mxu0 %v522_v32  ;;  %555 = vmatprep.subr.bf16.mxu1 %v554_v41 }
  0x1a   :  { %527 = vmatprep.subr.bf16.mxu0 %v526_v38 }
  0x1c   :  { %557 = vmatpush3.bf16.msra.mxu1 %v554_v41 }
  0x1d   :  { %529 = vmatpush3.bf16.msra.mxu0 %v526_v38  ;;  %559 = vmatprep.subr.bf16.mxu1 %v558_v46 }
  0x1e   :  { %531 = vmatprep.subr.bf16.mxu0 %v530_v42 }
  0x20   :  { %561 = vmatpush3.bf16.msra.mxu1 %v558_v46 }
  0x21   :  { %533 = vmatpush3.bf16.msra.mxu0 %v530_v42  ;;  %563 = vmatprep.subr.bf16.mxu1 %v562_v49 }
  0x22   :  { %567 = vmatprep.subr.bf16.mxu0 %v566_v53 }
  0x24   :  { %430 = vmatmul.mubr.f32.vlgmr.msra.gmra.mrb[0].mxu0 %v27_v43  ;;  %565 = vmatpush3.bf16.msra.mxu1 %v562_v49 }
  0x25   :  { %569 = vmatpush3.bf16.msra.mxu0 %v566_v53 }
  0x26   :  { %571 = vmatprep.subr.bf16.mxu0 %v570_v55 }
  0x29   :  { %573 = vmatpush3.bf16.msra.mxu0 %v570_v55 }
  0x2a   :  { %575 = vmatprep.subr.bf16.mxu0 %v574_v58 }
  0x2d   :  { %577 = vmatpush3.bf16.msra.mxu0 %v574_v58 }
  0x2e   :  { %579 = vmatprep.subr.bf16.mxu0 %v578_v61 }
  0x31   :  { %581 = vmatpush3.bf16.msra.mxu0 %v578_v61 }
  0x32   :  { %583 = vmatprep.subr.bf16.mxu0 %v582_v0 }
  0x35   :  { %585 = vmatpush3.bf16.msra.mxu0 %v582_v0 }
  0x36   :  { %587 = vmatprep.subr.bf16.mxu0 %v586_v3 }
  0x39   :  { %589 = vmatpush3.bf16.msra.mxu0 %v586_v3 }
  0x3a   :  { %591 = vmatprep.subr.bf16.mxu0 %v590_v15 }
  0x3d   :  { %593 = vmatpush3.bf16.msra.mxu0 %v590_v15 }
  0x3e   :  { %595 = vmatprep.subr.bf16.mxu0 %v594_v18 }
  0x41   :  { %597 = vmatpush3.bf16.msra.mxu0 %v594_v18 }
  0xf7   :  { %v431_v5 = vpop.f32.mrb[0].mxu0 }
  0xf8   :  { %v123_v6 = vadd.f32 %v431_v5, %v340_v4  ;;  %v117_v7 = vpop.f32.mrb[1].mxu0 }
  0xf9   :  { %v118_v8 = vadd.f32 %v340_v4, %v117_v7 }
  0xfa   :  { %v129_v9 = vmul.f32 0.01, %v123_v6  ;;  %vm127_vm1 = vcmp.gt.f32.partialorder %v123_v6, 0.0 }
  0xfb   :  { %vm126_vm0 = vcmp.gt.f32.partialorder %v118_v8, 0.0  ;;  %v128_v10 = vmul.f32 0.01, %v118_v8 }
  0xfc   :  { %v131_v12 = vsel %vm127_vm1, %v123_v6, %v129_v9 }
  0xfd   :  { %v130_v11 = vsel %vm126_vm0, %v118_v8, %v128_v10 }
  0xfe   :  { %464 = vmatprep.mubr.f32.mxu1 %v130_v11 }
  0xff   :  { %465 = vmatmul.mubr.f32.vlgmr.msra.gmra.mrb[0].mxu1 %v131_v12 }
 0x1d2   :  { %v466_v20 = vpop.f32.mrb[0].mxu1 }
 0x1d3   :  { %v227_v21 = vadd.f32 %v466_v20, %v341_v19  ;;  %v221_v22 = vpop.f32.mrb[1].mxu1 }
 0x1d4   :  { %v222_v23 = vadd.f32 %v341_v19, %v221_v22 }
 0x1d5   :  { %v233_v24 = vmul.f32 0.01, %v227_v21  ;;  %vm231_vm2 = vcmp.gt.f32.partialorder %v227_v21, 0.0 }
 0x1d6   :  { %v232_v25 = vmul.f32 0.01, %v222_v23  ;;  %vm230_vm3 = vcmp.gt.f32.partialorder %v222_v23, 0.0 }
 0x1d7   :  { %v235_v27 = vsel %vm231_vm2, %v227_v21, %v233_v24 }
 0x1d8   :  { %v234_v26 = vsel %vm230_vm3, %v222_v23, %v232_v25 }
 0x1d9   :  { %499 = vmatprep.mubr.f32.mxu0 %v234_v26 }
 0x1da   :  { %500 = vmatmul.mubr.f32.vlgmr.msra.gmra.mrb[2].mxu0 %v235_v27 }
 0x2ad   :  { %v501_v29 = vpop.f32.mrb[2].mxu0 }
 0x2ae   :  { %v331_v30 = vadd.f32 %v501_v29, %v342_v28  ;;  %v325_v31 = vpop.f32.mrb[3].mxu0 }
 0x2af   :  { %v326_v32 = vadd.f32 %v342_v28, %v325_v31 }
 0x2b0   :  { %335 = vst [vmem:[%s810_s7 + $0x8] sm:$0xff] %v331_v30 }
 0x2b1   :  { %334 = vst [vmem:[%s810_s7] sm:$0xff] %v326_v32 }

</bundles_post_ra>
